<compile_context>
chip_gen: v5e
topology: v5e:2x2
jax: 0.10.0
libtpu: 0.0.40
codegen_flags: <defaults>
</compile_context>

<pallas_src>
import functools

import jax
import jax.numpy as jnp
from jax.experimental import pallas as pl
from jax.experimental.pallas import tpu as pltpu


_VMEM_LIMIT = 32 * 1024 * 1024          # safe scoped-VMEM request on v5e/v6e/v7x
_DEFAULT_BLOCK_BYTES = 2 * 1024 * 1024  # per-block budget (double-buffered in+out ≈ 4x)


def _largest_divisor_leq(n, cap):
    """Largest divisor of n that is <= cap."""
    cap = max(1, min(n, cap))
    for d in range(cap, 0, -1):
        if n % d == 0:
            return d
    return 1


# --------------------------------------------------------------------------
# Fused fast path: one grid step handles a (TB, c, L) slab.
# --------------------------------------------------------------------------
def _se_fused_kernel(x_ref, w1_ref, w2_ref, o_ref, *, inv_l):
    # Squeeze: mean over seq axis, accumulated in f32 (no full f32 copy kept).
    y = jnp.sum(x_ref[...], axis=-1, dtype=jnp.float32) * inv_l              # (TB, c)
    # Excitation: Linear -> ReLU -> Linear -> Sigmoid (no biases).
    h = jnp.maximum(jnp.dot(y, w1_ref[...], preferred_element_type=jnp.float32), 0.0)
    z = jnp.dot(h, w2_ref[...], preferred_element_type=jnp.float32)          # (TB, c)
    s = jax.nn.sigmoid(z)
    # Re-scale in the native dtype (lane-dense store).
    o_ref[...] = (x_ref[...] * s[:, :, None].astype(x_ref.dtype)).astype(o_ref.dtype)


# --------------------------------------------------------------------------
# Two-pass fallback for large L.
# --------------------------------------------------------------------------
def _se_excite_kernel(x_ref, w1_ref, w2_ref, s_ref, acc_ref, *, inv_l):
    # grid = (batch blocks, L tiles); L is the trailing "arbitrary" axis.
    li = pl.program_id(1)

    @pl.when(li == 0)
    def _():
        acc_ref[...] = jnp.zeros_like(acc_ref)

    acc_ref[...] += jnp.sum(x_ref[...], axis=-1, dtype=jnp.float32)          # (TB, c)

    @pl.when(li == pl.num_programs(1) - 1)
    def _():
        y = acc_ref[...] * inv_l
        h = jnp.maximum(jnp.dot(y, w1_ref[...], preferred_element_type=jnp.float32), 0.0)
        z = jnp.dot(h, w2_ref[...], preferred_element_type=jnp.float32)
        s_ref[...] = jax.nn.sigmoid(z)[:, :, None].astype(s_ref.dtype)       # (TB, c, 1)


def _se_scale_kernel(x_ref, s_ref, o_ref):
    s = s_ref[...]                                                           # (TB, c, 1)
    o_ref[...] = (x_ref[...] * s.astype(x_ref.dtype)).astype(o_ref.dtype)


# --------------------------------------------------------------------------
# Wrapper
# --------------------------------------------------------------------------
def se_block(x, w1, w2, *, block_bytes=_DEFAULT_BLOCK_BYTES):
    """SE block forward.  x: (bs, c, L); w1: (c, c//r); w2: (c//r, c)."""
    bs, c, L = x.shape
    c_r = w1.shape[1]
    assert w1.shape == (c, c_r) and w2.shape == (c_r, c)
    itemsize = jnp.dtype(x.dtype).itemsize
    inv_l = 1.0 / L

    # ---------------- Fast path: full L per block, tile over batch. ----------------
    full_l_bytes = c * L * itemsize
    if full_l_bytes <= block_bytes:
        tb_cap = max(1, block_bytes // full_l_bytes)
        if bs >= 2:
            # Keep >= 2 grid steps so the pipeline (and v7x megacore) has work.
            tb_cap = min(tb_cap, bs // 2)
        tb = _largest_divisor_leq(bs, tb_cap)
        grid = (bs // tb,)

        return pl.pallas_call(
            functools.partial(_se_fused_kernel, inv_l=inv_l),
            out_shape=jax.ShapeDtypeStruct((bs, c, L), x.dtype),
            grid=grid,
            in_specs=[
                pl.BlockSpec((tb, c, L), lambda b: (b, 0, 0)),
                pl.BlockSpec((c, c_r), lambda b: (0, 0)),
                pl.BlockSpec((c_r, c), lambda b: (0, 0)),
            ],
            out_specs=pl.BlockSpec((tb, c, L), lambda b: (b, 0, 0)),
            compiler_params=pltpu.CompilerParams(
                dimension_semantics=("parallel",),
                vmem_limit_bytes=_VMEM_LIMIT,
            ),
        )(x, w1, w2)

    # ---------------- Fallback: big L -> two pipelined passes over L tiles. --------
    tb = 1
    if L % 128 == 0:
        # Largest multiple-of-128 L-tile that divides L and fits the budget.
        cap_lanes = max(1, (block_bytes // (tb * c * itemsize)) // 128)
        tl = _largest_divisor_leq(L // 128, cap_lanes) * 128
    else:
        # TODO(synk): pad L to a multiple of 128 in the wrapper instead of using a
        # full-extent (possibly oversized) block when L is ragged and very large.
        tl = L

    num_b, num_l = bs // tb, L // tl
    blk_bytes = tb * c * tl * itemsize
    vmem_limit = max(_VMEM_LIMIT, min(4 * blk_bytes + (4 << 20), 48 * 1024 * 1024))

    # Pass 1: squeeze (accumulate over L tiles) + excitation -> per-batch scales.
    s = pl.pallas_call(
        functools.partial(_se_excite_kernel, inv_l=inv_l),
        out_shape=jax.ShapeDtypeStruct((bs, c, 1), jnp.float32),
        grid=(num_b, num_l),
        in_specs=[
            pl.BlockSpec((tb, c, tl), lambda b, l: (b, 0, l)),
            pl.BlockSpec((c, c_r), lambda b, l: (0, 0)),
            pl.BlockSpec((c_r, c), lambda b, l: (0, 0)),
        ],
        out_specs=pl.BlockSpec((tb, c, 1), lambda b, l: (b, 0, 0)),
        scratch_shapes=[pltpu.VMEM((tb, c), jnp.float32)],
        compiler_params=pltpu.CompilerParams(
            dimension_semantics=("parallel", "arbitrary"),
            vmem_limit_bytes=vmem_limit,
        ),
    )(x, w1, w2)

    # Pass 2: channel-wise rescale, fully parallel over batch and L tiles.
    return pl.pallas_call(
        _se_scale_kernel,
        out_shape=jax.ShapeDtypeStruct((bs, c, L), x.dtype),
        grid=(num_b, num_l),
        in_specs=[
            pl.BlockSpec((tb, c, tl), lambda b, l: (b, 0, l)),
            pl.BlockSpec((tb, c, 1), lambda b, l: (b, 0, 0)),
        ],
        out_specs=pl.BlockSpec((tb, c, tl), lambda b, l: (b, 0, l)),
        compiler_params=pltpu.CompilerParams(
            dimension_semantics=("parallel", "parallel"),
            vmem_limit_bytes=vmem_limit,
        ),
    )(x, s)


def se_block_ref(x, w1, w2):
    """Pure-JAX reference mirroring the PyTorch forward."""
    y = jnp.mean(x, axis=-1)
    h = jnp.maximum(y @ w1, 0.0)
    s = jax.nn.sigmoid(h @ w2)
    return x * s[:, :, None]


if __name__ == "__main__":
    bs, c, r, L = 4, 32, 8, 256   # c divisible by r; L a multiple of 128
    c_r = c // r

    key = jax.random.PRNGKey(0)
    kx, k1, k2 = jax.random.split(key, 3)

    x = jax.random.normal(kx, (bs, c, L), dtype=jnp.float32)
    # Deterministic stand-ins for the (transposed) nn.Linear weights.
    w1 = jax.random.normal(k1, (c, c_r), dtype=jnp.float32) * 0.1
    w2 = jax.random.normal(k2, (c_r, c), dtype=jnp.float32) * 0.1

    ref = se_block_ref(x, w1, w2)

    # Fast fused path (batch-tiled grid).
    out = jax.block_until_ready(se_block(x, w1, w2))
    assert out.shape == (bs, c, L)
    assert jnp.allclose(out, ref, atol=1e-5, rtol=1e-5)

    # Force the two-pass L-tiled path with a tiny block budget to exercise it.
    out2 = jax.block_until_ready(se_block(x, w1, w2, block_bytes=c * 128 * 4))
    assert jnp.allclose(out2, ref, atol=1e-5, rtol=1e-5)

    print("KERNEL_OK")
</pallas_src>

<mosaic_0001>
module attributes {stable_mosaic.version = 11 : i64} {
  func.func @_se_fused_kernel(%arg0: i32, %arg1: memref<2x32x256xf32, #tpu.memory_space<vmem>>, %arg2: memref<32x4xf32, #tpu.memory_space<vmem>>, %arg3: memref<4x32xf32, #tpu.memory_space<vmem>>, %arg4: memref<2x32x256xf32, #tpu.memory_space<vmem>>) attributes {dimension_semantics = [#tpu.dimension_semantics<parallel>], iteration_bounds = array<i64: 2>, scalar_prefetch = 0 : i64, scratch_operands = 0 : i64, tpu.core_type = #tpu.core_type<tc>, window_params = [{transform_indices = @transform_0, window_bounds = array<i64: 2, 32, 256>}, {pipeline_mode = #tpu.pipeline_mode<synchronous>, transform_indices = @transform_1, window_bounds = array<i64: 32, 4>}, {pipeline_mode = #tpu.pipeline_mode<synchronous>, transform_indices = @transform_2, window_bounds = array<i64: 4, 32>}, {transform_indices = @transform_3, window_bounds = array<i64: 2, 32, 256>}]} {
    %c0 = arith.constant 0 : index
    %c0_0 = arith.constant 0 : index
    %c0_1 = arith.constant 0 : index
    %0 = vector.load %arg1[%c0, %c0_0, %c0_1] : memref<2x32x256xf32, #tpu.memory_space<vmem>>, vector<2x32x256xf32>
    %cst = arith.constant dense<0.000000e+00> : vector<2x32xf32>
    %1 = vector.multi_reduction <add>, %0, %cst [2] : vector<2x32x256xf32> to vector<2x32xf32>
    %cst_2 = arith.constant 3.906250e-03 : f32
    %2 = vector.broadcast %cst_2 : f32 to vector<2x32xf32>
    %3 = arith.mulf %1, %2 : vector<2x32xf32>
    %c0_3 = arith.constant 0 : index
    %c0_4 = arith.constant 0 : index
    %4 = vector.load %arg2[%c0_3, %c0_4] : memref<32x4xf32, #tpu.memory_space<vmem>>, vector<32x4xf32>
    %cst_5 = arith.constant dense<0.000000e+00> : vector<2x4xf32>
    %5 = tpu.matmul %3, %4, %cst_5 {dimension_numbers = #tpu.dot_dimension_numbers<[1], [0], [0], [1], [0, 0, 1, 1], [], []>} : vector<2x32xf32>, vector<32x4xf32>, vector<2x4xf32> -> vector<2x4xf32>
    %cst_6 = arith.constant 0.000000e+00 : f32
    %6 = vector.broadcast %cst_6 : f32 to vector<2x4xf32>
    %7 = arith.maximumf %5, %6 : vector<2x4xf32>
    %c0_7 = arith.constant 0 : index
    %c0_8 = arith.constant 0 : index
    %8 = vector.load %arg3[%c0_7, %c0_8] : memref<4x32xf32, #tpu.memory_space<vmem>>, vector<4x32xf32>
    %cst_9 = arith.constant dense<0.000000e+00> : vector<2x32xf32>
    %9 = tpu.matmul %7, %8, %cst_9 {dimension_numbers = #tpu.dot_dimension_numbers<[1], [0], [0], [1], [0, 0, 1, 1], [], []>} : vector<2x4xf32>, vector<4x32xf32>, vector<2x32xf32> -> vector<2x32xf32>
    %10 = arith.negf %9 : vector<2x32xf32>
    %11 = math.exp %10 : vector<2x32xf32>
    %cst_10 = arith.constant 1.000000e+00 : f32
    %12 = vector.broadcast %cst_10 : f32 to vector<2x32xf32>
    %13 = arith.addf %12, %11 : vector<2x32xf32>
    %14 = arith.divf %12, %13 : vector<2x32xf32>
    %c0_11 = arith.constant 0 : index
    %c0_12 = arith.constant 0 : index
    %c0_13 = arith.constant 0 : index
    %15 = vector.load %arg1[%c0_11, %c0_12, %c0_13] : memref<2x32x256xf32, #tpu.memory_space<vmem>>, vector<2x32x256xf32>
    %16 = vector.shape_cast %14 : vector<2x32xf32> to vector<2x32x1xf32>
    %17 = vector.broadcast %16 : vector<2x32x1xf32> to vector<2x32x256xf32>
    %18 = arith.mulf %15, %17 : vector<2x32x256xf32>
    %c0_14 = arith.constant 0 : index
    %c0_15 = arith.constant 0 : index
    %c0_16 = arith.constant 0 : index
    %19 = vector.load %arg4[%c0_14, %c0_15, %c0_16] : memref<2x32x256xf32, #tpu.memory_space<vmem>>, vector<2x32x256xf32>
    tpu.vector_store %arg4[%c0_14, %c0_15, %c0_16], %18 {strides = array<i32>} : memref<2x32x256xf32, #tpu.memory_space<vmem>>, vector<2x32x256xf32>,
    return
  }
  func.func @transform_0(%arg0: i32) -> (i32, i32, i32) {
    %c0_i32 = arith.constant 0 : i32
    %c0_i32_0 = arith.constant 0 : i32
    %c0_i32_1 = arith.constant 0 : i32
    return %arg0, %c0_i32, %c0_i32_0 : i32, i32, i32
  }
  func.func @transform_1(%arg0: i32) -> (i32, i32) {
    %c0_i32 = arith.constant 0 : i32
    %c0_i32_0 = arith.constant 0 : i32
    %c0_i32_1 = arith.constant 0 : i32
    return %c0_i32, %c0_i32_0 : i32, i32
  }
  func.func @transform_2(%arg0: i32) -> (i32, i32) {
    %c0_i32 = arith.constant 0 : i32
    %c0_i32_0 = arith.constant 0 : i32
    %c0_i32_1 = arith.constant 0 : i32
    return %c0_i32, %c0_i32_0 : i32, i32
  }
  func.func @transform_3(%arg0: i32) -> (i32, i32, i32) {
    %c0_i32 = arith.constant 0 : i32
    %c0_i32_0 = arith.constant 0 : i32
    %c0_i32_1 = arith.constant 0 : i32
    return %arg0, %c0_i32, %c0_i32_0 : i32, i32, i32
  }
}

</mosaic_0001>

<bundles_post_ra>
// kernel: tpu_custom_call.1
= control target key start
LH: loop header
LB: loop body
LE: loop exit
PB: predicated region body
PF: predicated region fallthrough
CT: control target
= control target key end

     0   :  { %8 = vsyncpa [#allocation3], 0  ;;  %s960_s0 = inlined_call_operand.hbm [shape: f32[4,32,256], index: 0, kind: input, shape index: {}]   ;;  %s961_s1 = inlined_call_operand.vmem [shape: f32[32,4], index: 1, kind: input, shape index: {}]   ;;  %s962_s2 = inlined_call_operand.vmem [shape: f32[4,32], index: 2, kind: input, shape index: {}]   ;;  %s963_s3 = inlined_call_operand.hbm [shape: f32[4,32,256], index: 3, kind: output, shape index: {}]  }
   0x1   :  { %10 = vsyncpa [#allocation3 + $0x1], 0 }
   0x2   :  { %11 = vsyncpa [#allocation4], 0 }
   0x3   :  { %13 = vsyncpa [#allocation4 + $0x1], 0  ;;  %s731_s12 = smov 0   ;;  %s733_s13 = smov 0  }
   0x4   :  { %s735_s14 = smov 0   ;;  %s737_s15 = smov 0  }
   0x5 LB: > { %s752_s16 = sadd.s32 4294967295, %s705_s15   ;;  %s522_s17 = sadd.s32 4294967294, %s705_s15   ;;  %s705_s15 = sphi %s737_s15, %s973_s15   ;;  %s701_s14 = sphi %s735_s14, %s972_s14   ;;  %s697_s13 = sphi %s733_s13, %s971_s13   ;;  %s693_s12 = sphi %s731_s12, %s970_s12  }
   0x6   : > { %s756_s18 = sadd.s32 1, %s705_s15   ;;  %s26_s19 = sadd.s32 1, %s701_s14 }
   0x7   : > { %s23_s20 = ssub.s32 %s705_s15, %s756_s18  ;;  %p33_p0 = scmp.ne.s32.totalorder %s701_s14, %s697_s13 }
   0x8   : > { %p24_p1 = scmp.eq.s32.totalorder %s23_s20, 0  ;;  %p34_p2 = scmp.eq.s32.totalorder %s705_s15, 0 }
   0x9   : > { %p39_p3 = scmp.ne.s32.totalorder %s697_s13, %s693_s12  ;;  %p40_p4 = scmp.eq.s32.totalorder %s752_s16, 0 }
   0xa   : > { %s768_s21 = scalar_select %p24_p1, %s701_s14, %s26_s19  }
   0xb   : > { %p770_p5 = por %p34_p2, %p33_p0  ;;  %p774_p6 = por %p40_p4, %p39_p3 }
   0xc   : > { %p105_p7 = scmp.eq.s32.totalorder %s752_s16, 1  ;;  %p111_p8 = scmp.eq.s32.totalorder %s522_s17, 1 }
   0xd   : > { %p558_p10 = scmp.lt.s32.totalorder %s705_s15, 2  ;;  %s137_s26 = sand.u32 1, %s701_s14  }
   0xe   : > { %p781_p11 = por %p105_p7, %p33_p0  ;;  %p785_p12 = por %p111_p8, %p39_p3 }
   0xf   : > { %s543_s27 = sshll.u32 %s705_s15, 7  ;;  %s525_s28 = sshll.u32 %s137_s26, 7 }
  0x10   : > { %s147_s4 = scalar_lea.hbm %s960_s0, %s543_s27  ;;  %s141_s6 = scalar_lea.vmem [#allocation2], %s525_s28 }
  0x11   : > { %s148_s5 = sshll.u32 %s147_s4, 4  ;;  %s150_s7 = sshll.u32 %s141_s6, 4  ;;  %s149_s5 = int_to_ptr.hbm [resolvable:$true] %s148_s5  ;;  %s151_s7 = int_to_ptr.vmem [resolvable:$true] %s150_s7 }
  0x12   : > { %p796_p13 = pnand %p558_p10, %p770_p5  ;;  %p529_p0 = scmp.ge.s32.totalorder %s705_s15, 1 }
  0x13   : > { %p158_p1 = scmp.lt.s32.totalorder %s705_s15, 3  ;;  %s138_s9 = scalar_lea.sflag [#allocation3], %s137_s26 }
  0x14   : > { %s609_s10 = sshra.s32 %s149_s5, 4  ;;  %p613_p3 = pneg %p796_p13  ;;  %s610_s10 = int_to_ptr.hbm [resolvable:$true] %s609_s10 }
  0x15   : > { %s611_s11 = scalar_lea.hbm %s610_s10, 128  ;;  %s616_s20 = scalar_lea.hbm %s960_s0, 256 }
  0x16   : > { %p612_p2 = scmp.ne.s32.totalorder %s610_s10, %s611_s11  ;;  %p617_p5 = scmp.lt.s32.totalorder %s610_s10, %s960_s0 }
  0x17   : > { %p618_p8 = scmp.lt.s32.totalorder %s616_s20, %s611_s11 }
  0x18   : > { %p614_p4 = pnand %p613_p3, %p612_p2 }
  0x19   : > { %p619_p10 = por %p618_p8, %p617_p5 }
  0x1a   : > { %p615_p7 = pneg %p614_p4 }
  0x1c   : > { %p620_p9 = pnand %p619_p10, %p615_p7 }
  0x1e   : > { %623 = shalt.err (!%p620_p9)
}
  0x1f   : > { %s707_s26 = smov 256   ;;  %s708_s28 = smov 16  }
  0x20   : > { %553 = dma.hbm_to_vmem [thread:$0]  (!%p796_p13), %s149_s5, 2048, %s151_s7, %s138_s9, %s707_s26, %s707_s26, %s708_s28  }
  0x21   : > { %p159_p2 = pnand %p529_p0, %p158_p1 }
  0x22   : > { %s817_s29 = sand.u32 (!%p159_p2), 1, %s697_s13  }
  0x23   : > { %162 = sbr.rel (%p159_p2) target bundleno = 621 (0x26d), region = 32  ;;  %s530_s30 = sshll.u32 (!%p159_p2), %s817_s29, 7 }
  0x24   : > { %s165_s4 = scalar_lea.sflag (!%p159_p2), [#allocation3], %s817_s29  ;;  %s168_s6 = scalar_lea.vmem (!%p159_p2), [#allocation2], %s530_s30 }
  0x28   : > { %684 = dma.done.wait (%p774_p6), %s165_s4, 2048  }
  0x29   : > { %686 = vsyncadd (%p774_p6), %s165_s4, 4294965248  ;;  %v827_v0 = vld [vmem:[%s168_s6 + $0x40] sm:$0xff]  ;;  %v829_v1 = vld [vmem:[%s168_s6 + $0x48] sm:$0xff]  ;;  %v254_v31 = vlaneseq  ;;  %vm259_vm0 = vcmask 130112   ;;  %vm263_vm1 = vcmask 195712   ;;  %vm267_vm2 = vcmask 261312  }
  0x2a   : > { %v831_v2 = vld [vmem:[%s168_s6] sm:$0xff]  ;;  %v222_v3 = vadd.f32 %v829_v1, %v827_v0  ;;  %v835_v4 = vld [vmem:[%s168_s6 + $0x8] sm:$0xff]  ;;  %v845_v9 = vld [vmem:[%s168_s6 + $0x50] sm:$0xff]  ;;  %vm276_vm3 = vcmask 1041409   ;;  %vm278_vm4 = vcmask 261120   ;;  %vm307_vm5 = vcmask 1043456  }
  0x2b   : > { %v837_v5 = vld [vmem:[%s168_s6 + $0x20] sm:$0xff]  ;;  %v839_v6 = vld [vmem:[%s168_s6 + $0x28] sm:$0xff]  ;;  %v210_v7 = vadd.f32 %v835_v4, %v831_v2  ;;  %v847_v10 = vld [vmem:[%s168_s6 + $0x58] sm:$0xff]  ;;  %v255_v32 = vand.u32 127, %v254_v31  ;;  %vm303_vm6 = vcmask 31744   ;;  %s894_s22 = scalar_lea.vmem [#allocation5], %s530_s30 }
  0x2c   : > { %v216_v8 = vadd.f32 %v839_v6, %v837_v5  ;;  %223 = vadd.xlane.f32.xlu1 %v222_v3  ;;  %v849_v11 = vld [vmem:[%s168_s6 + $0x10] sm:$0xff]  ;;  %v851_v12 = vld [vmem:[%s168_s6 + $0x18] sm:$0xff]  ;;  %v853_v13 = vld [vmem:[%s168_s6 + $0x60] sm:$0xff]  ;;  %v225_v15 = vadd.f32 %v847_v10, %v845_v9  ;;  %s545_s27 = sshll.u32 %s752_s16, 7  ;;  %s446_s4 = sshll.u32 %s894_s22, 4  ;;  %s447_s4 = int_to_ptr.vmem [resolvable:$true] %s446_s4 }
  0x2d   : > { %211 = vadd.xlane.f32.xlu0 %v210_v7  ;;  %v855_v14 = vld [vmem:[%s168_s6 + $0x68] sm:$0xff]  ;;  %v213_v16 = vadd.f32 %v851_v12, %v849_v11  ;;  %v863_v18 = vld [vmem:[%s168_s6 + $0x70] sm:$0xff]  ;;  %v865_v19 = vld [vmem:[%s168_s6 + $0x78] sm:$0xff]  ;;  %v257_v34 = vadd.s32 4294967288, %v255_v32  ;;  %v261_v43 = vadd.s32 4294967280, %v255_v32  ;;  %v265_v47 = vadd.s32 4294967272, %v255_v32  ;;  %s445_s30 = scalar_lea.hbm %s963_s3, %s545_s27 }
  0x2e   : > { %217 = vadd.xlane.f32.xlu2 %v216_v8  ;;  %v228_v17 = vadd.f32 %v855_v14, %v853_v13  ;;  %v867_v20 = vld [vmem:[%s168_s6 + $0x30] sm:$0xff]  ;;  %v869_v21 = vld [vmem:[%s168_s6 + $0x38] sm:$0xff]  ;;  %v231_v22 = vadd.f32 %v865_v19, %v863_v18  ;;  %v243_v26 = vld [vmem:[%s961_s1 + $0x8] sm:$0xff]  ;;  %s448_s6 = sshll.u32 %s445_s30, 4  ;;  %s433_s16 = scalar_lea.sflag [#allocation4], %s817_s29  ;;  %s449_s6 = int_to_ptr.hbm [resolvable:$true] %s448_s6 }
  0x2f   : > { %v219_v23 = vadd.f32 %v869_v21, %v867_v20  ;;  %v245_v24 = vld [vmem:[%s961_s1 + $0x18] sm:$0xff]  ;;  %v244_v25 = vld [vmem:[%s961_s1 + $0x10] sm:$0xff]  ;;  %v242_v27 = vld [vmem:[%s961_s1] sm:$0xff]  ;;  %s653_s23 = sshra.s32 %s449_s6, 4  ;;  %s659_s9 = scalar_lea.hbm %s963_s3, 256  ;;  %s654_s23 = int_to_ptr.hbm [resolvable:$true] %s653_s23 }
  0x30   : > { %293 = vmatpush.msra.mxu0 %v245_v24  ;;  %v302_v3 = vld [vmem:[%s962_s2] sm:$0xf]  ;;  %s655_s5 = scalar_lea.hbm %s654_s23, 128  ;;  %p660_p0 = scmp.lt.s32.totalorder %s654_s23, %s963_s3 }
  0x31   : > { %533 = vmatpush.msk.msra.mxu1 %vm307_vm5, %v302_v3  ;;  %p656_p6 = scmp.ne.s32.totalorder %s654_s23, %s655_s5  ;;  %p661_p1 = scmp.lt.s32.totalorder %s659_s9, %s655_s5 }
  0x32   : > { %294 = vmatpush.msra.mxu0 %v244_v25 }
  0x33   : > { %p657_p9 = pnand %p656_p6, %p781_p11  ;;  %p662_p3 = por %p661_p1, %p660_p0 }
  0x34   : > { %226 = vadd.xlane.f32.xlu1 %v225_v15  ;;  %295 = vmatpush.msra.mxu0 %v243_v26  ;;  %v352_v15 = vshrl.u32 %v254_v31, 7 }
  0x35   : > { %214 = vadd.xlane.f32.xlu0 %v213_v16  ;;  %p658_p13 = pneg %p657_p9 }
  0x36   : > { %229 = vadd.xlane.f32.xlu2 %v228_v17  ;;  %296 = vmatpush.msra.mxu0 %v242_v27  ;;  %v365_v16 = vadd.s32 16, %v352_v15  ;;  %v359_v17 = vadd.s32 8, %v352_v15 }
  0x37   : > { %596 = vset.pattern.permute.xlu2 %v352_v15  ;;  %p663_p4 = pnand %p662_p3, %p658_p13 }
  0x38   : > { %598 = vset.pattern.permute.xlu1 %v365_v16  ;;  %597 = vset.pattern.permute.xlu0 %v359_v17 }
  0x3c   : > { %232 = vadd.xlane.f32.xlu1 %v231_v22 }
  0x3d   : > { %220 = vadd.xlane.f32.xlu0 %v219_v23 }
  0x9f   : > { %v224_v28 = vpop.xlane.xlu1 %223 }
  0xa0   : > { %v212_v29 = vpop.xlane.xlu0 %211  ;;  %v238_v39 = vmul.f32 0.00390625, %v224_v28 }
  0xa1   : > { %v218_v30 = vpop.xlane.xlu2 %217  ;;  %v234_v40 = vmul.f32 0.00390625, %v212_v29 }
  0xa2   : > { %v269_v45 = vperm.slane %v238_v39, %v255_v32  ;;  %v236_v46 = vmul.f32 0.00390625, %v218_v30 }
  0xa3   : > { %v256_v48 = vperm.slane %v234_v40, %v255_v32 }
  0xa4   : > { %v262_v56 = vperm.slane %v236_v46, %v261_v43 }
  0xa7   : > { %v227_v33 = vpop.xlane.xlu1 %226 }
  0xa8   : > { %v239_v35 = vmul.f32 0.00390625, %v227_v33  ;;  %v215_v36 = vpop.xlane.xlu0 %214 }
  0xa9   : > { %v230_v37 = vpop.xlane.xlu2 %229  ;;  %v235_v38 = vmul.f32 0.00390625, %v215_v36 }
  0xaa   : > { %v240_v41 = vmul.f32 0.00390625, %v230_v37  ;;  %v270_v42 = vperm.slane %v239_v35, %v257_v34  ;;  %v371_v37 = vadd.s32 24, %v352_v15 }
  0xab   : > { %v258_v44 = vperm.slane %v235_v38, %v257_v34 }
  0xac   : > { %v272_v49 = vperm.slane %v240_v41, %v261_v43  ;;  %v271_v51 = vsel %vm259_vm0, %v270_v42, %v269_v45 }
  0xad   : > { %v260_v54 = vsel %vm259_vm0, %v258_v44, %v256_v48 }
  0xae   : > { %v273_v59 = vsel %vm263_vm1, %v272_v49, %v271_v51  ;;  %v264_v60 = vsel %vm263_vm1, %v262_v56, %v260_v54 }
  0xaf   : > { %v233_v50 = vpop.xlane.xlu1 %232 }
  0xb0   : > { %v241_v52 = vmul.f32 0.00390625, %v233_v50  ;;  %v221_v53 = vpop.xlane.xlu0 %220 }
  0xb1   : > { %v237_v55 = vmul.f32 0.00390625, %v221_v53 }
  0xb2   : > { %v274_v57 = vperm.slane %v241_v52, %v265_v47 }
  0xb3   : > { %v266_v58 = vperm.slane %v237_v55, %v265_v47 }
  0xb4   : > { %v275_v61 = vsel %vm267_vm2, %v274_v57, %v273_v59 }
  0xb5   : > { %v268_v62 = vsel %vm267_vm2, %v266_v58, %v264_v60 }
  0xb6   : > { %v277_v63 = vsel %vm276_vm3, %v275_v61, %v268_v62 }
  0xb7   : > { %532 = vmatmul.msk.f32.vlgmr.msra.gmra.mxu0 %vm278_vm4, %v277_v63 }
 0x134   : > { %v298_v7 = vpop.f32.mrf.mxu0 }
 0x135   : > { %v301_v8 = vmax.f32 %v298_v7, 0.0 }
 0x137   : > { %534 = vmatmul.msk.f32.vlgmr.msra.gmra.mxu1 %vm303_vm6, %v301_v8 }
 0x1b4   : > { %v328_v22 = vpop.f32.mrf.mxu1 }
 0x1b5   : > { %v535_v23 = vmul.f32 -1.442695, %v328_v22 }
 0x1b7   : > { %605 = vpow2.f32 %v535_v23 }
 0x1bd   : > { %v606_v24 = vpop.eup %605 }
 0x1be   : > { %v334_v25 = vadd.f32 1.0, %v606_v24 }
 0x1c0   : > { %607 = vrcp.f32 %v334_v25  ;;  %v346_v29 = vand.u32 2147483648, %v334_v25  ;;  %v344_v32 = vand.u32 2147483647, %v334_v25  ;;  %vm340_vm8 = vweird.f32 %v334_v25 }
 0x1c2   : > { %v347_v31 = vor.u32 1.1754944e-38, %v346_v29  ;;  %vm345_vm10 = vcmp.eq.f32.partialorder %v344_v32, 8.507059e+37 }
 0x1c6   : > { %v608_v26 = vpop.eup %607 }
 0x1c7   : > { %v336_v27 = vmul.f32 %v608_v26, %v334_v25  ;;  %vm341_vm7 = vweird.f32 %v608_v26 }
 0x1c8   : > { %vm342_vm9 = vmor %vm340_vm8, %vm341_vm7 }
 0x1c9   : > { %v337_v28 = vsub.f32 1.0, %v336_v27 }
 0x1cb   : > { %v338_v30 = vmul.f32 %v608_v26, %v337_v28 }
 0x1cd   : > { %v339_v33 = vadd.f32 %v608_v26, %v338_v30 }
 0x1cf   : > { %v343_v34 = vsel %vm342_vm9, %v608_v26, %v339_v33 }
 0x1d0   : > { %v348_v35 = vsel %vm345_vm10, %v347_v31, %v343_v34 }
 0x1d1   : > { %v350_v36 = vperm.slane %v348_v35, 0  ;;  %v375_v38 = vperm.slane %v348_v35, 1 }
 0x1d3   : > { %367 = vperm.xlu1 %598, %v350_v36   ;;  %361 = vperm.xlu0 %597, %v350_v36  }
 0x1d4   : > { %355 = vperm.xlu2 %596, %v350_v36  }
 0x1db   : > { %601 = vset.pattern.permute.xlu1 %v359_v17  ;;  %604 = vset.pattern.permute.xlu0 %v371_v37 }
 0x1dc   : > { %599 = vset.pattern.permute.xlu2 %v371_v37 }
 0x1e3   : > { %386 = vperm.xlu1 %601, %v375_v38  }
 0x1e4   : > { %373 = vperm.xlu2 %599, %v350_v36  }
 0x1eb   : > { %603 = vset.pattern.permute.xlu1 %v371_v37 }
 0x1ec   : > { %600 = vset.pattern.permute.xlu2 %v352_v15 }
 0x1f3   : > { %398 = vperm.xlu1 %603, %v375_v38  }
 0x1f4   : > { %380 = vperm.xlu2 %600, %v375_v38  }
 0x1fc   : > { %602 = vset.pattern.permute.xlu2 %v365_v16 }
 0x204   : > { %392 = vperm.xlu2 %602, %v375_v38  }
 0x22e   : > { %v356_v39 = vpop.permute.xlu2 %355 }
 0x22f   : > { %v400_v40 = vmul.f32 %v356_v39, %v831_v2  ;;  %v401_v41 = vmul.f32 %v356_v39, %v835_v4 }
 0x231   : > { %416 = vst [vmem:[%s894_s22] sm:$0xff] %v400_v40 }
 0x232   : > { %417 = vst [vmem:[%s894_s22 + $0x8] sm:$0xff] %v401_v41 }
 0x23e   : > { %v374_v42 = vpop.permute.xlu2 %373 }
 0x23f   : > { %v406_v43 = vmul.f32 %v374_v42, %v867_v20  ;;  %v407_v2 = vmul.f32 %v374_v42, %v869_v21 }
 0x241   : > { %422 = vst [vmem:[%s894_s22 + $0x30] sm:$0xff] %v406_v43 }
 0x242   : > { %423 = vst [vmem:[%s894_s22 + $0x38] sm:$0xff] %v407_v2 }
 0x245   : > { %v368_v4 = vpop.permute.xlu1 %367  ;;  %v362_v44 = vpop.permute.xlu0 %361 }
 0x246   : > { %v404_v45 = vmul.f32 %v368_v4, %v837_v5  ;;  %v405_v46 = vmul.f32 %v368_v4, %v839_v6  ;;  %v402_v47 = vmul.f32 %v362_v44, %v849_v11  ;;  %v403_v48 = vmul.f32 %v362_v44, %v851_v12 }
 0x248   : > { %420 = vst [vmem:[%s894_s22 + $0x20] sm:$0xff] %v404_v45 }
 0x249   : > { %421 = vst [vmem:[%s894_s22 + $0x28] sm:$0xff] %v405_v46 }
 0x24a   : > { %418 = vst [vmem:[%s894_s22 + $0x10] sm:$0xff] %v402_v47 }
 0x24b   : > { %419 = vst [vmem:[%s894_s22 + $0x18] sm:$0xff] %v403_v48 }
 0x24e   : > { %v381_v20 = vpop.permute.xlu2 %380 }
 0x24f   : > { %v408_v21 = vmul.f32 %v381_v20, %v827_v0  ;;  %v409_v5 = vmul.f32 %v381_v20, %v829_v1 }
 0x251   : > { %424 = vst [vmem:[%s894_s22 + $0x40] sm:$0xff] %v408_v21 }
 0x252   : > { %425 = vst [vmem:[%s894_s22 + $0x48] sm:$0xff] %v409_v5 }
 0x255   : > { %v387_v6 = vpop.permute.xlu1 %386 }
 0x256   : > { %v410_v11 = vmul.f32 %v387_v6, %v845_v9  ;;  %v411_v49 = vmul.f32 %v387_v6, %v847_v10 }
 0x258   : > { %426 = vst [vmem:[%s894_s22 + $0x50] sm:$0xff] %v410_v11 }
 0x259   : > { %427 = vst [vmem:[%s894_s22 + $0x58] sm:$0xff] %v411_v49 }
 0x25e   : > { %v393_v12 = vpop.permute.xlu2 %392 }
 0x25f   : > { %v412_v50 = vmul.f32 %v393_v12, %v853_v13  ;;  %v413_v0 = vmul.f32 %v393_v12, %v855_v14 }
 0x261   : > { %428 = vst [vmem:[%s894_s22 + $0x60] sm:$0xff] %v412_v50 }
 0x262   : > { %429 = vst [vmem:[%s894_s22 + $0x68] sm:$0xff] %v413_v0 }
 0x265   : > { %v399_v1 = vpop.permute.xlu1 %398 }
 0x266   : > { %v414_v9 = vmul.f32 %v399_v1, %v863_v18  ;;  %v415_v10 = vmul.f32 %v399_v1, %v865_v19 }
 0x268   : > { %430 = vst [vmem:[%s894_s22 + $0x70] sm:$0xff] %v414_v9 }
 0x269   : > { %431 = vst [vmem:[%s894_s22 + $0x78] sm:$0xff] %v415_v10 }
 0x26a   : > { %666 = shalt.err (!%p663_p4)
}
 0x26b   : > { %s709_s29 = smov 256   ;;  %s710_s17 = smov 16  }
 0x26c   : > { %548 = dma.vmem_to_hbm [thread:$0]  (%p781_p11), %s447_s4, 2048, %s449_s6, %s433_s16, %s709_s29, %s709_s29, %s710_s17  }
 0x26d PF: > { %s463_s19 = sand.u32 1, %s693_s12   ;;  %p969_p7 = scmp.ge.s32.totalorder %s705_s15, 2 }
 0x26e   : > { %s464_s20 = scalar_lea.sflag [#allocation4], %s463_s19 }
 0x26f   : > { %p555_p5 = pnand %p969_p7, %p785_p12 }
 0x271   : > { %p556_p8 = pneg %p555_p5 }
 0x273   : > { %688 = dma.done.wait (%p556_p8), %s464_s20, 2048  }
 0x274   : > { %690 = vsyncadd (%p556_p8), %s464_s20, 4294965248  ;;  %p16_p10 = scmp.ge.s32.totalorder %s756_s18, 4   ;;  %s970_s12 = smov %s697_s13 }
 0x275   : > { %s971_s13 = smov %s701_s14  ;;  %s972_s14 = smov %s768_s21 }
 0x276   : > { %s973_s15 = smov %s756_s18  ;;  %18 = sbr.rel (!%p16_p10) target bundleno = 5 (0x5), region = 77 }
 0x27b   :  { %470 = vsyncpa [#allocation3], 1 }
 0x27c   :  { %472 = vsyncpa [#allocation3 + $0x1], 1 }
 0x27d   :  { %473 = vsyncpa [#allocation4], 1 }
 0x27e   :  { %475 = vsyncpa [#allocation4 + $0x1], 1 }

</bundles_post_ra>
